<compile_context>
chip_gen: v7x
topology: tpu7x:2x2x1
jax: 0.10.0
libtpu: 0.0.40
codegen_flags: <defaults>
</compile_context>

<pallas_src>
import jax
import jax.numpy as jnp
from jax.experimental import pallas as pl
from jax.experimental.pallas import tpu as pltpu

TIME_INDEX = {'t_s': 0, 't_s_orig': 1, 't_e': 2, 't_e_orig': 3, 't_str': 4, 't_i': 5}

_FALLBACK_VMEM_LIMIT = 48 * 1024 * 1024   # safe on every generation
_VMEM_LIMIT_CACHE = []


def _round_up(x, m):
    return ((x + m - 1) // m) * m


def _cdiv(a, b):
    return (a + b - 1) // b


def _vmem_limit():
    """Generation-aware per-kernel VMEM budget (bytes)."""
    if not _VMEM_LIMIT_CACHE:
        limit = _FALLBACK_VMEM_LIMIT
        try:
            cap = getattr(pltpu.get_tpu_info(), 'vmem_capacity_bytes', None)
            if cap:
                if cap >= 96 * 1024 * 1024:
                    limit = 100 * 1024 * 1024            # v5e / v6e: 128 MiB physical
                else:
                    limit = min(_FALLBACK_VMEM_LIMIT,     # v7x: 64 MiB/TC, keep headroom
                                (int(cap) * 3) // 4)
        except Exception:
            pass
        _VMEM_LIMIT_CACHE.append(limit)
    return _VMEM_LIMIT_CACHE[0]


def _pad_rows(x, m):
    pad = (-x.shape[0]) % m
    if pad:
        x = jnp.pad(x, ((0, pad), (0, 0)))
    return x


def _pad_cols(x, m):
    pad = (-x.shape[-1]) % m
    if pad:
        x = jnp.pad(x, ((0, 0), (0, pad)))
    return x


# ----------------------------------------------------------------------------
# Kernel 1: point-wise score.
#   r_t   = complex_hadamard(r, t)
#   score = sum_d (s_re*o_re + s_im*o_im)*r_t_re + (s_re*o_im - s_im*o_re)*r_t_im
# ----------------------------------------------------------------------------
def _simple_score_kernel(s_re_ref, s_im_ref, r_re_ref, r_im_ref,
                         o_re_ref, o_im_ref, t_re_ref, t_im_ref, out_ref):
    f32 = lambda ref: ref[...].astype(jnp.float32)
    r_re, r_im = f32(r_re_ref), f32(r_im_ref)
    t_re, t_im = f32(t_re_ref), f32(t_im_ref)
    # complex_hadamard(r, t)
    rr = r_re * t_re - r_im * t_im
    ri = r_re * t_im + r_im * t_re
    s_re, s_im = f32(s_re_ref), f32(s_im_ref)
    o_re, o_im = f32(o_re_ref), f32(o_im_ref)
    # complex_3way_simple(s, r_t, o), reduced over the embedding dim.
    sro = (s_re * o_re + s_im * o_im) * rr + (s_re * o_im - s_im * o_re) * ri
    # NOTE: the (br, 1) f32 output is <1% of the per-block HBM traffic (the
    # 8 bf16 input streams dominate), so we keep the sublane-major store rather
    # than paying an in-kernel lane<->sublane relayout for a lane-dense tile.
    out_ref[...] = jnp.sum(sro, axis=-1, keepdims=True)


def simple_score(s_re, s_im, r_re, r_im, o_re, o_im, t_re, t_im, *,
                 block_rows=None, compute_dtype=jnp.bfloat16,
                 vmem_limit_bytes=None):
    """Row-wise (n, D) x 8 -> (n,) float32 scores."""
    n, d = s_re.shape
    if vmem_limit_bytes is None:
        vmem_limit_bytes = _vmem_limit()
    # .astype is a no-op when the caller already gathered bf16 streams.
    args = [_pad_rows(a.astype(compute_dtype), 16)
            for a in (s_re, s_im, r_re, r_im, o_re, o_im, t_re, t_im)]
    n_pad = args[0].shape[0]

    # Per-row double-buffered bytes: 8 bf16 input streams + the f32 output.
    itemsize = jnp.dtype(compute_dtype).itemsize
    per_row = 8 * d * itemsize * 2 + 4 * 2
    budget = (vmem_limit_bytes * 3) // 4          # headroom for Mosaic scratch
    max_rows = max(16, (budget // per_row) // 16 * 16)
    br = min(n_pad, max_rows)
    if block_rows is not None:
        br = min(br, _round_up(block_rows, 16))
    # Keep >=2 grid steps when there is enough work so both v7x TCs get a share.
    if n_pad >= 128:
        br = min(br, _round_up(_cdiv(n_pad, 2), 16))
    br = max(16, (br // 16) * 16)

    out = pl.pallas_call(
        _simple_score_kernel,
        out_shape=jax.ShapeDtypeStruct((n_pad, 1), jnp.float32),
        grid=(_cdiv(n_pad, br),),
        in_specs=[pl.BlockSpec((br, d), lambda i: (i, 0))] * 8,
        out_specs=pl.BlockSpec((br, 1), lambda i: (i, 0)),
        compiler_params=pltpu.CompilerParams(
            dimension_semantics=("parallel",),
            vmem_limit_bytes=vmem_limit_bytes),
    )(*args)
    return out[:n, 0]


# ----------------------------------------------------------------------------
# Kernel 2: (rows, K) query @ (K, N) table on the MXU (bf16 in, f32 acc).
# Table axis is the OUTER grid dim: the table tile stays resident across the
# inner row-block axis (Pallas skips the DMA when the block index repeats), so
# the big table is streamed from HBM exactly once and only the small query is
# re-streamed.
# ----------------------------------------------------------------------------
def _qtable_matmul_kernel(q_ref, tbl_ref, out_ref):
    out_ref[...] = jnp.dot(q_ref[...], tbl_ref[...],
                           preferred_element_type=jnp.float32)


def query_table_score(q, table, *, block_rows=1024, tile_n=2048,
                      compute_dtype=jnp.bfloat16, vmem_limit_bytes=None):
    """(n, K) x (K, N) -> (n, N_pad) float32 (caller slices columns)."""
    n, k = q.shape
    kt, nn = table.shape
    assert k == kt, (k, kt)
    if vmem_limit_bytes is None:
        vmem_limit_bytes = _vmem_limit()

    q = _pad_rows(q.astype(compute_dtype), 16)
    table = table.astype(compute_dtype)       # no-op for the cached bf16 tables
    table = _pad_cols(table, 128)             # no-op for the cached tables
    n_pad = q.shape[0]
    nn_pad = table.shape[1]

    itemsize = jnp.dtype(compute_dtype).itemsize
    # block_rows >= ~768 keeps the streamed-table matmul compute-bound on v6e
    # (ridge ~680 FLOP/byte); v5e/v7x are fine at smaller blocks too.
    br = min(_round_up(block_rows, 16), n_pad)
    tn = min(_round_up(tile_n, 128), nn_pad)

    # Shrink tiles until the double-buffered working set fits the VMEM budget
    # (matters on v7x, which has only 64 MiB of VMEM per TensorCore).
    def working_set(br_, tn_):
        return 2 * (br_ * k * itemsize + k * tn_ * itemsize + br_ * tn_ * 4)

    budget = (vmem_limit_bytes * 3) // 4
    while working_set(br, tn) > budget:
        if tn > 512:
            tn = max(128, (tn // 2 // 128) * 128)
        elif br > 256:
            br = max(16, (br // 2 // 16) * 16)
        elif tn > 128:
            tn = max(128, (tn // 2 // 128) * 128)
        elif br > 16:
            br = max(16, (br // 2 // 16) * 16)
        else:
            break

    # Keep >=2 grid steps when there is meaningful work (v7x has 2 TCs and
    # "parallel" axes are sharded across them; a 1-step grid idles one TC).
    if _cdiv(nn_pad, tn) * _cdiv(n_pad, br) == 1:
        if nn_pad >= 256:
            tn = _round_up(_cdiv(nn_pad, 2), 128)
        elif n_pad >= 32:
            br = _round_up(_cdiv(n_pad, 2), 16)

    grid = (_cdiv(nn_pad, tn), _cdiv(n_pad, br))   # table axis OUTER, rows inner
    # TODO(synk): on v5e consider pipeline_mode=pl.Buffered(3) on the query spec
    # to hide inner-axis DMA jitter (the table tile is already resident).
    out = pl.pallas_call(
        _qtable_matmul_kernel,
        out_shape=jax.ShapeDtypeStruct((n_pad, nn_pad), jnp.float32),
        grid=grid,
        in_specs=[pl.BlockSpec((br, k), lambda j, i: (i, 0)),    # query rows
                  pl.BlockSpec((k, tn), lambda j, i: (0, j))],   # table tile
        out_specs=pl.BlockSpec((br, tn), lambda j, i: (i, j)),
        compiler_params=pltpu.CompilerParams(
            dimension_semantics=("parallel", "parallel"),
            vmem_limit_bytes=vmem_limit_bytes),
    )(q, table)
    return out[:n]


# ----------------------------------------------------------------------------
# Parameter init (mirrors torch.nn.init.normal_(0, 0.05))
# ----------------------------------------------------------------------------
def init_params(key, entity_count, relation_count, timeInterval_count, embedding_dim):
    # NOTE: for best MXU utilization keep embedding_dim a multiple of 128 in
    # production configs (one vreg row is 128 lanes wide; K = 2*D feeds the MXU).
    ks = jax.random.split(key, 6)
    std = 0.05
    return dict(
        E_re=std * jax.random.normal(ks[0], (entity_count, embedding_dim), jnp.float32),
        E_im=std * jax.random.normal(ks[1], (entity_count, embedding_dim), jnp.float32),
        R_re=std * jax.random.normal(ks[2], (2 * relation_count, embedding_dim), jnp.float32),
        R_im=std * jax.random.normal(ks[3], (2 * relation_count, embedding_dim), jnp.float32),
        T_re=std * jax.random.normal(ks[4], (timeInterval_count + 2, embedding_dim), jnp.float32),
        T_im=std * jax.random.normal(ks[5], (timeInterval_count + 2, embedding_dim), jnp.float32),
    )


def make_state(params, compute_dtype=jnp.bfloat16):
    """Build the cached forward state ONCE (call at init / after each post_epoch).

    Caches (a) bf16 copies of the embedding tables for the point-wise gathers
    and (b) pre-transposed, 128-column-padded bf16 score tables so the
    full-softmax / all-time paths pay zero per-call concat/transpose/cast.
    """
    E_re, E_im = params['E_re'], params['E_im']
    R_re, R_im = params['R_re'], params['R_im']
    T_re, T_im = params['T_re'], params['T_im']
    n_ent, D = E_re.shape
    n_time = T_re.shape[0] - 2        # last 2 rows are smoothing padding

    ent_table = _pad_cols(
        jnp.concatenate([E_re, E_im], axis=-1).T.astype(compute_dtype), 128)
    time_table = _pad_cols(
        jnp.concatenate([T_re[:-2], T_im[:-2]], axis=-1).T.astype(compute_dtype), 128)
    # TODO(synk): on v7x the cached entity table could be stored as fp8 (e4m3 +
    # per-row scale folded in after the matmul) to halve the dominant HBM stream.
    return dict(
        params=params, dim=D, n_entities=n_ent, n_times=n_time,
        E_re_bf=E_re.astype(compute_dtype), E_im_bf=E_im.astype(compute_dtype),
        R_re_bf=R_re.astype(compute_dtype), R_im_bf=R_im.astype(compute_dtype),
        T_re_bf=T_re.astype(compute_dtype), T_im_bf=T_im.astype(compute_dtype),
        ent_table=ent_table, time_table=time_table)


# ----------------------------------------------------------------------------
# Forward wrapper mirroring TComplex_lx.forward
# ----------------------------------------------------------------------------
def tcomplex_lx_forward(state, s, r, o, t):
    p = state['params']
    E_re, E_im = p['E_re'], p['E_im']
    R_re, R_im = p['R_re'], p['R_im']
    T_re, T_im = p['T_re'], p['T_im']
    D = state['dim']

    if t is not None:
        if t.shape[-1] == len(TIME_INDEX):
            t = t[:, :, TIME_INDEX['t_s']]
        else:
            t = t[:, TIME_INDEX['t_s'], :]

    if t is None:
        # Score every (s, r, o) row against all usable time points:
        #   score[., tau] = sum_d A[., d]*T_re[tau, d] + B[., d]*T_im[tau, d]
        # with  P = s_re*o_re + s_im*o_im,  M = s_re*o_im - s_im*o_re,
        #       A = P*r_re + M*r_im,        B = M*r_re - P*r_im,
        # i.e. a query-vs-table MXU matmul against the cached time table.
        s_re = E_re[s] if s is not None else E_re[None]
        s_im = E_im[s] if s is not None else E_im[None]
        r_re = R_re[r] if r is not None else R_re[None]
        r_im = R_im[r] if r is not None else R_im[None]
        o_re = E_re[o] if o is not None else E_re[None]
        o_im = E_im[o] if o is not None else E_im[None]
        P = s_re * o_re + s_im * o_im
        M = s_re * o_im - s_im * o_re
        A = P * r_re + M * r_im
        Bq = M * r_re - P * r_im
        lead = A.shape[:-1]
        n_time = state['n_times']
        if len(lead) >= 1 and lead[-1] == 1:
            q = jnp.concatenate([A, Bq], axis=-1).reshape(-1, 2 * D)
            out = query_table_score(q, state['time_table'])[:, :n_time]
            return out.reshape(jnp.broadcast_shapes(lead, (1, n_time)))
        # General-broadcast fallback (unusual shapes).  NOTE: materializes the
        # full (.., n_time, D) broadcast in HBM; large workloads should use the
        # matmul path above.
        t_re_all, t_im_all = T_re[None, :-2, :], T_im[None, :-2, :]
        shp = jnp.broadcast_shapes(s_re.shape, r_re.shape, o_re.shape, t_re_all.shape)
        flat = lambda x: jnp.broadcast_to(x, shp).reshape(-1, D)
        out = simple_score(flat(s_re), flat(s_im), flat(r_re), flat(r_im),
                           flat(o_re), flat(o_im), flat(t_re_all), flat(t_im_all))
        return out.reshape(shp[:-1])

    if s is not None and o is not None and s.shape == o.shape:
        # Point-wise scoring of aligned (s, r, o, t) rows.  Broadcast + pad the
        # *index* arrays and gather straight from the cached bf16 tables so each
        # of the 8 embedding streams hits HBM exactly once.
        s_idx = jnp.asarray(s)
        o_idx = jnp.asarray(o)
        r_idx = jnp.asarray(r) if r is not None else jnp.arange(R_re.shape[0])[None, :]
        t_idx = jnp.asarray(t)
        out_shape = jnp.broadcast_shapes(s_idx.shape, r_idx.shape,
                                         o_idx.shape, t_idx.shape)
        flat_idx = lambda x: jnp.broadcast_to(x, out_shape).reshape(-1)
        s_f, r_f, o_f, t_f = map(flat_idx, (s_idx, r_idx, o_idx, t_idx))
        n = s_f.shape[0]
        pad = (-n) % 16
        if pad:
            zpad = lambda x: jnp.pad(x, (0, pad))
            s_f, r_f, o_f, t_f = map(zpad, (s_f, r_f, o_f, t_f))
        out = simple_score(
            state['E_re_bf'][s_f], state['E_im_bf'][s_f],
            state['R_re_bf'][r_f], state['R_im_bf'][r_f],
            state['E_re_bf'][o_f], state['E_im_bf'][o_f],
            state['T_re_bf'][t_f], state['T_im_bf'][t_f])
        return out[:n].reshape(out_shape)

    # complex_3way_fullsoftmax: score against every entity via the cached table.
    # Query formation uses the f32 params (small: batch rows only) for precision;
    # the query is cast to bf16 at the pallas_call boundary.
    r_re = R_re[r] if r is not None else R_re[None]
    r_im = R_im[r] if r is not None else R_im[None]
    t_re, t_im = T_re[t], T_im[t]
    rr = r_re * t_re - r_im * t_im           # complex_hadamard(r, t)
    ri = r_re * t_im + r_im * t_re
    if o is None:
        s_re = E_re[s] if s is not None else E_re[None]
        s_im = E_im[s] if s is not None else E_im[None]
        q_re = s_re * rr - s_im * ri         # subject given; score all objects
        q_im = s_im * rr + s_re * ri
    else:
        o_re, o_im = E_re[o], E_im[o]
        q_re = o_re * rr + o_im * ri         # object given; score all subjects
        q_im = o_im * rr - o_re * ri
    lead = q_re.shape[:-1]
    q = jnp.concatenate([q_re, q_im], axis=-1).reshape(-1, 2 * D)
    out = query_table_score(q, state['ent_table'])[:, :state['n_entities']]
    return out.reshape(lead + (state['n_entities'],))


if __name__ == "__main__":
    entity_count, relation_count, timeInterval_count, D = 32, 8, 16, 32
    B = 8

    key = jax.random.PRNGKey(0)
    pkey, skey, rkey, okey, tkey = jax.random.split(key, 5)
    params = init_params(pkey, entity_count, relation_count, timeInterval_count, D)
    state = make_state(params)   # cached bf16 tables, built once

    s = jax.random.randint(skey, (B, 1), 0, entity_count)
    r = jax.random.randint(rkey, (B, 1), 0, 2 * relation_count)
    o = jax.random.randint(okey, (B, 1), 0, entity_count)
    # t arrives as (B, 1, 6) fact-time tuples; only the t_s column (index 0) is used.
    t_s = jax.random.randint(tkey, (B, 1, 1), 0, timeInterval_count + 2)
    t = jnp.concatenate([t_s] * len(TIME_INDEX), axis=-1)

    # Path 1: point-wise scoring (s, r, o, t all given, s.shape == o.shape).
    out_simple = jax.block_until_ready(tcomplex_lx_forward(state, s, r, o, t))
    # Path 2: full-softmax scoring against every object (o is None).
    out_full = jax.block_until_ready(tcomplex_lx_forward(state, s, r, None, t))
    # Path 3: scoring against all time points (t is None).
    out_time = jax.block_until_ready(tcomplex_lx_forward(state, s, r, o, None))

    # Pure-JAX f32 reference for all three paths.
    E_re, E_im = params['E_re'], params['E_im']
    R_re, R_im = params['R_re'], params['R_im']
    T_re, T_im = params['T_re'], params['T_im']
    tt = t[:, :, TIME_INDEX['t_s']]
    s_re, s_im = E_re[s], E_im[s]
    r_re, r_im = R_re[r], R_im[r]
    o_re, o_im = E_re[o], E_im[o]
    t_re, t_im = T_re[tt], T_im[tt]
    rr = r_re * t_re - r_im * t_im
    ri = r_re * t_im + r_im * t_re
    ref_simple = ((s_re * o_re + s_im * o_im) * rr
                  + (s_re * o_im - s_im * o_re) * ri).sum(-1)
    q_re = s_re * rr - s_im * ri
    q_im = s_im * rr + s_re * ri
    ref_full = q_re @ E_re.T + q_im @ E_im.T
    t_re_all, t_im_all = T_re[None, :-2, :], T_im[None, :-2, :]
    rr_all = r_re * t_re_all - r_im * t_im_all
    ri_all = r_re * t_im_all + r_im * t_re_all
    ref_time = ((s_re * o_re + s_im * o_im) * rr_all
                + (s_re * o_im - s_im * o_re) * ri_all).sum(-1)

    assert out_simple.shape == ref_simple.shape
    assert out_full.shape == ref_full.shape
    assert out_time.shape == ref_time.shape
    # bf16 operands with f32 accumulation -> slightly looser tolerances than pure f32.
    assert jnp.allclose(out_simple, ref_simple, atol=3e-4, rtol=3e-2)
    assert jnp.allclose(out_full, ref_full, atol=3e-4, rtol=3e-2)
    assert jnp.allclose(out_time, ref_time, atol=3e-4, rtol=3e-2)

    print("KERNEL_OK")
</pallas_src>

<mosaic_0001>
module attributes {stable_mosaic.version = 11 : i64} {
  func.func @_simple_score_kernel(%arg0: i32, %arg1: memref<16x32xbf16, #tpu.memory_space<vmem>>, %arg2: memref<16x32xbf16, #tpu.memory_space<vmem>>, %arg3: memref<16x32xbf16, #tpu.memory_space<vmem>>, %arg4: memref<16x32xbf16, #tpu.memory_space<vmem>>, %arg5: memref<16x32xbf16, #tpu.memory_space<vmem>>, %arg6: memref<16x32xbf16, #tpu.memory_space<vmem>>, %arg7: memref<16x32xbf16, #tpu.memory_space<vmem>>, %arg8: memref<16x32xbf16, #tpu.memory_space<vmem>>, %arg9: memref<16x1xf32, #tpu.memory_space<vmem>>) attributes {dimension_semantics = [#tpu.dimension_semantics<parallel>], iteration_bounds = array<i64: 1>, scalar_prefetch = 0 : i64, scratch_operands = 0 : i64, tpu.core_type = #tpu.core_type<tc>, window_params = [{transform_indices = @transform_0, window_bounds = array<i64: 16, 32>}, {transform_indices = @transform_1, window_bounds = array<i64: 16, 32>}, {transform_indices = @transform_2, window_bounds = array<i64: 16, 32>}, {transform_indices = @transform_3, window_bounds = array<i64: 16, 32>}, {transform_indices = @transform_4, window_bounds = array<i64: 16, 32>}, {transform_indices = @transform_5, window_bounds = array<i64: 16, 32>}, {transform_indices = @transform_6, window_bounds = array<i64: 16, 32>}, {transform_indices = @transform_7, window_bounds = array<i64: 16, 32>}, {transform_indices = @transform_8, window_bounds = array<i64: 16, 1>}]} {
    %c0 = arith.constant 0 : index
    %c0_0 = arith.constant 0 : index
    %0 = vector.load %arg3[%c0, %c0_0] : memref<16x32xbf16, #tpu.memory_space<vmem>>, vector<16x32xbf16>
    %1 = arith.extf %0 : vector<16x32xbf16> to vector<16x32xf32>
    %c0_1 = arith.constant 0 : index
    %c0_2 = arith.constant 0 : index
    %2 = vector.load %arg4[%c0_1, %c0_2] : memref<16x32xbf16, #tpu.memory_space<vmem>>, vector<16x32xbf16>
    %3 = arith.extf %2 : vector<16x32xbf16> to vector<16x32xf32>
    %c0_3 = arith.constant 0 : index
    %c0_4 = arith.constant 0 : index
    %4 = vector.load %arg7[%c0_3, %c0_4] : memref<16x32xbf16, #tpu.memory_space<vmem>>, vector<16x32xbf16>
    %5 = arith.extf %4 : vector<16x32xbf16> to vector<16x32xf32>
    %c0_5 = arith.constant 0 : index
    %c0_6 = arith.constant 0 : index
    %6 = vector.load %arg8[%c0_5, %c0_6] : memref<16x32xbf16, #tpu.memory_space<vmem>>, vector<16x32xbf16>
    %7 = arith.extf %6 : vector<16x32xbf16> to vector<16x32xf32>
    %8 = arith.mulf %1, %5 : vector<16x32xf32>
    %9 = arith.mulf %3, %7 : vector<16x32xf32>
    %10 = arith.subf %8, %9 : vector<16x32xf32>
    %11 = arith.mulf %1, %7 : vector<16x32xf32>
    %12 = arith.mulf %3, %5 : vector<16x32xf32>
    %13 = arith.addf %11, %12 : vector<16x32xf32>
    %c0_7 = arith.constant 0 : index
    %c0_8 = arith.constant 0 : index
    %14 = vector.load %arg1[%c0_7, %c0_8] : memref<16x32xbf16, #tpu.memory_space<vmem>>, vector<16x32xbf16>
    %15 = arith.extf %14 : vector<16x32xbf16> to vector<16x32xf32>
    %c0_9 = arith.constant 0 : index
    %c0_10 = arith.constant 0 : index
    %16 = vector.load %arg2[%c0_9, %c0_10] : memref<16x32xbf16, #tpu.memory_space<vmem>>, vector<16x32xbf16>
    %17 = arith.extf %16 : vector<16x32xbf16> to vector<16x32xf32>
    %c0_11 = arith.constant 0 : index
    %c0_12 = arith.constant 0 : index
    %18 = vector.load %arg5[%c0_11, %c0_12] : memref<16x32xbf16, #tpu.memory_space<vmem>>, vector<16x32xbf16>
    %19 = arith.extf %18 : vector<16x32xbf16> to vector<16x32xf32>
    %c0_13 = arith.constant 0 : index
    %c0_14 = arith.constant 0 : index
    %20 = vector.load %arg6[%c0_13, %c0_14] : memref<16x32xbf16, #tpu.memory_space<vmem>>, vector<16x32xbf16>
    %21 = arith.extf %20 : vector<16x32xbf16> to vector<16x32xf32>
    %22 = arith.mulf %15, %19 : vector<16x32xf32>
    %23 = arith.mulf %17, %21 : vector<16x32xf32>
    %24 = arith.addf %22, %23 : vector<16x32xf32>
    %25 = arith.mulf %24, %10 : vector<16x32xf32>
    %26 = arith.mulf %15, %21 : vector<16x32xf32>
    %27 = arith.mulf %17, %19 : vector<16x32xf32>
    %28 = arith.subf %26, %27 : vector<16x32xf32>
    %29 = arith.mulf %28, %13 : vector<16x32xf32>
    %30 = arith.addf %25, %29 : vector<16x32xf32>
    %cst = arith.constant dense<0.000000e+00> : vector<16xf32>
    %31 = vector.multi_reduction <add>, %30, %cst [1] : vector<16x32xf32> to vector<16xf32>
    %32 = vector.shape_cast %31 : vector<16xf32> to vector<16x1xf32>
    %c0_15 = arith.constant 0 : index
    %c0_16 = arith.constant 0 : index
    %33 = vector.load %arg9[%c0_15, %c0_16] : memref<16x1xf32, #tpu.memory_space<vmem>>, vector<16x1xf32>
    tpu.vector_store %arg9[%c0_15, %c0_16], %32 {strides = array<i32>} : memref<16x1xf32, #tpu.memory_space<vmem>>, vector<16x1xf32>,
    return
  }
  func.func @transform_0(%arg0: i32) -> (i32, i32) {
    %c0_i32 = arith.constant 0 : i32
    %c0_i32_0 = arith.constant 0 : i32
    return %arg0, %c0_i32 : i32, i32
  }
  func.func @transform_1(%arg0: i32) -> (i32, i32) {
    %c0_i32 = arith.constant 0 : i32
    %c0_i32_0 = arith.constant 0 : i32
    return %arg0, %c0_i32 : i32, i32
  }
  func.func @transform_2(%arg0: i32) -> (i32, i32) {
    %c0_i32 = arith.constant 0 : i32
    %c0_i32_0 = arith.constant 0 : i32
    return %arg0, %c0_i32 : i32, i32
  }
  func.func @transform_3(%arg0: i32) -> (i32, i32) {
    %c0_i32 = arith.constant 0 : i32
    %c0_i32_0 = arith.constant 0 : i32
    return %arg0, %c0_i32 : i32, i32
  }
  func.func @transform_4(%arg0: i32) -> (i32, i32) {
    %c0_i32 = arith.constant 0 : i32
    %c0_i32_0 = arith.constant 0 : i32
    return %arg0, %c0_i32 : i32, i32
  }
  func.func @transform_5(%arg0: i32) -> (i32, i32) {
    %c0_i32 = arith.constant 0 : i32
    %c0_i32_0 = arith.constant 0 : i32
    return %arg0, %c0_i32 : i32, i32
  }
  func.func @transform_6(%arg0: i32) -> (i32, i32) {
    %c0_i32 = arith.constant 0 : i32
    %c0_i32_0 = arith.constant 0 : i32
    return %arg0, %c0_i32 : i32, i32
  }
  func.func @transform_7(%arg0: i32) -> (i32, i32) {
    %c0_i32 = arith.constant 0 : i32
    %c0_i32_0 = arith.constant 0 : i32
    return %arg0, %c0_i32 : i32, i32
  }
  func.func @transform_8(%arg0: i32) -> (i32, i32) {
    %c0_i32 = arith.constant 0 : i32
    %c0_i32_0 = arith.constant 0 : i32
    return %arg0, %c0_i32 : i32, i32
  }
}

</mosaic_0001>

<bundles_post_ra>
// kernel: tpu_custom_call.1
= control target key start
LH: loop header
LB: loop body
LE: loop exit
PB: predicated region body
PF: predicated region fallthrough
CT: control target
= control target key end

     0   :  { %13 = vsyncpa [#allocation3], 0  ;;  %s487_s0 = inlined_call_operand.hbm [shape: bf16[16,32], index: 0, kind: input, shape index: {}]   ;;  %s488_s1 = inlined_call_operand.hbm [shape: bf16[16,32], index: 1, kind: input, shape index: {}]   ;;  %s489_s2 = inlined_call_operand.hbm [shape: bf16[16,32], index: 2, kind: input, shape index: {}]   ;;  %s490_s3 = inlined_call_operand.vmem [shape: bf16[16,32], index: 3, kind: input, shape index: {}]   ;;  %s491_s4 = inlined_call_operand.hbm [shape: bf16[16,32], index: 4, kind: input, shape index: {}]   ;;  %s492_s5 = inlined_call_operand.vmem [shape: bf16[16,32], index: 5, kind: input, shape index: {}]   ;;  %s493_s6 = inlined_call_operand.hbm [shape: bf16[16,32], index: 6, kind: input, shape index: {}]   ;;  %s494_s7 = inlined_call_operand.vmem [shape: bf16[16,32], index: 7, kind: input, shape index: {}]   ;;  %s495_s8 = inlined_call_operand.vmem [shape: f32[16,1], index: 8, kind: output, shape index: {}]  }
   0x1   :  { %14 = vsyncpa [#allocation5], 0 }
   0x2   :  { %15 = vsyncpa [#allocation8], 0  ;;  %s331_s27 = smov [#allocation4]   ;;  %s332_s29 = smov [#allocation7]  }
   0x3   :  { %s33_s28 = sshll.u32 %s331_s27, 4  ;;  %s59_s30 = sshll.u32 %s332_s29, 4  ;;  %s34_s28 = int_to_ptr.vmem [resolvable:$true] %s33_s28  ;;  %s383_s30 = int_to_ptr.vmem [resolvable:$true] %s59_s30 }
   0x4   :  { %s215_s11 = scalar_lea.hbm %s488_s1, 128 }
   0x5   :  { %p216_p0 = scmp.ne.s32.totalorder %s488_s1, %s215_s11  ;;  %p219_p1 = scmp.lt.u32.totalorder %s215_s11, %s488_s1 }
   0x7   :  { %p221_p2 = pnand %p219_p1, %p216_p0 }
   0x9   :  { %224 = shalt.err (!%p221_p2)
}
   0xa   :  { %s225_s16 = scalar_lea.vmem %s34_s28, 128  ;;  %p230_p4 = scmp.lt.s32.totalorder %s34_s28, %s34_s28 }
   0xb   :  { %p226_p3 = scmp.ne.s32.totalorder %s34_s28, %s225_s16  ;;  %p231_p5 = scmp.lt.s32.totalorder %s225_s16, %s225_s16 }
   0xd   :  { %p232_p6 = por %p231_p5, %p230_p4 }
   0xf   :  { %p233_p7 = pnand %p232_p6, %p226_p3 }
  0x11   :  { %236 = shalt.err (!%p233_p7)
}
  0x12   :  { %s333_s17 = smov 64   ;;  %s334_s18 = smov 4  }
  0x13   :  { %39 = dma.hbm_to_vmem [thread:$0]  %s488_s1, 128, %s34_s28, [#allocation5], %s333_s17, %s333_s17, %s334_s18  }
  0x14   :  { %s237_s23 = scalar_lea.hbm %s491_s4, 128 }
  0x15   :  { %p238_p8 = scmp.ne.s32.totalorder %s491_s4, %s237_s23  ;;  %p241_p9 = scmp.lt.u32.totalorder %s237_s23, %s491_s4 }
  0x17   :  { %p243_p10 = pnand %p241_p9, %p238_p8 }
  0x19   :  { %246 = shalt.err (!%p243_p10)
}
  0x1a   :  { %s247_s29 = scalar_lea.vmem %s383_s30, 128  ;;  %p252_p12 = scmp.lt.s32.totalorder %s383_s30, %s383_s30 }
  0x1b   :  { %p248_p11 = scmp.ne.s32.totalorder %s383_s30, %s247_s29  ;;  %p253_p13 = scmp.lt.s32.totalorder %s247_s29, %s247_s29 }
  0x1d   :  { %p254_p0 = por %p253_p13, %p252_p12 }
  0x1f   :  { %p255_p1 = pnand %p254_p0, %p248_p11 }
  0x21   :  { %258 = shalt.err (!%p255_p1)
}
  0x22   :  { %65 = dma.hbm_to_vmem [thread:$0]  %s491_s4, 128, %s383_s30, [#allocation8], %s333_s17, %s333_s17, %s334_s18  }
  0x23   :  { %s335_s9 = smov [#allocation2]   ;;  %s336_s11 = smov [#allocation6]  }
  0x24   :  { %s21_s10 = sshll.u32 %s335_s9, 4  ;;  %s45_s12 = sshll.u32 %s336_s11, 4  ;;  %s22_s10 = int_to_ptr.vmem [resolvable:$true] %s21_s10  ;;  %s420_s12 = int_to_ptr.vmem [resolvable:$true] %s45_s12 }
  0x25   :  { %s259_s15 = scalar_lea.hbm %s487_s0, 128 }
  0x26   :  { %p260_p2 = scmp.ne.s32.totalorder %s487_s0, %s259_s15  ;;  %p263_p3 = scmp.lt.u32.totalorder %s259_s15, %s487_s0 }
  0x28   :  { %p265_p4 = pnand %p263_p3, %p260_p2 }
  0x2a   :  { %268 = shalt.err (!%p265_p4)
}
  0x2b   :  { %s269_s4 = scalar_lea.vmem %s22_s10, 128  ;;  %p274_p6 = scmp.lt.s32.totalorder %s22_s10, %s22_s10 }
  0x2c   :  { %p270_p5 = scmp.ne.s32.totalorder %s22_s10, %s269_s4  ;;  %p275_p7 = scmp.lt.s32.totalorder %s269_s4, %s269_s4 }
  0x2e   :  { %p276_p8 = por %p275_p7, %p274_p6 }
  0x30   :  { %p277_p9 = pnand %p276_p8, %p270_p5 }
  0x32   :  { %280 = shalt.err (!%p277_p9)
}
  0x33   :  { %27 = dma.hbm_to_vmem [thread:$0]  %s487_s0, 128, %s22_s10, [#allocation3], %s333_s17, %s333_s17, %s334_s18  }
  0x34   :  { %s281_s25 = scalar_lea.hbm %s489_s2, 128 }
  0x35   :  { %p282_p10 = scmp.ne.s32.totalorder %s489_s2, %s281_s25  ;;  %p285_p11 = scmp.lt.u32.totalorder %s281_s25, %s489_s2 }
  0x37   :  { %p287_p12 = pnand %p285_p11, %p282_p10 }
  0x39   :  { %290 = shalt.err (!%p287_p12)
}
  0x3a   :  { %s291_s28 = scalar_lea.vmem %s420_s12, 128  ;;  %p296_p0 = scmp.lt.s32.totalorder %s420_s12, %s420_s12 }
  0x3b   :  { %p292_p13 = scmp.ne.s32.totalorder %s420_s12, %s291_s28  ;;  %p297_p1 = scmp.lt.s32.totalorder %s291_s28, %s291_s28 }
  0x3d   :  { %p298_p2 = por %p297_p1, %p296_p0 }
  0x3f   :  { %p299_p3 = pnand %p298_p2, %p292_p13 }
  0x41   :  { %302 = shalt.err (!%p299_p3)
}
  0x42   :  { %51 = dma.hbm_to_vmem [thread:$0]  %s489_s2, 128, %s420_s12, [#allocation5], %s333_s17, %s333_s17, %s334_s18  }
  0x43   :  { %s337_s10 = smov [#allocation9]   ;;  %s303_s15 = scalar_lea.hbm %s493_s6, 128 }
  0x44   :  { %s73_s11 = sshll.u32 %s337_s10, 4  ;;  %p304_p4 = scmp.ne.s32.totalorder %s493_s6, %s303_s15  ;;  %s74_s11 = int_to_ptr.vmem [resolvable:$true] %s73_s11 }
  0x45   :  { %p307_p5 = scmp.lt.u32.totalorder %s303_s15, %s493_s6 }
  0x47   :  { %p309_p6 = pnand %p307_p5, %p304_p4 }
  0x49   :  { %312 = shalt.err (!%p309_p6)
}
  0x4a   :  { %s313_s4 = scalar_lea.vmem %s74_s11, 128  ;;  %p318_p8 = scmp.lt.s32.totalorder %s74_s11, %s74_s11 }
  0x4b   :  { %p314_p7 = scmp.ne.s32.totalorder %s74_s11, %s313_s4  ;;  %p319_p9 = scmp.lt.s32.totalorder %s313_s4, %s313_s4 }
  0x4d   :  { %p320_p10 = por %p319_p9, %p318_p8 }
  0x4f   :  { %p321_p11 = pnand %p320_p10, %p314_p7 }
  0x51   :  { %324 = shalt.err (!%p321_p11)
}
  0x52   :  { %79 = dma.hbm_to_vmem [thread:$0]  %s493_s6, 128, %s74_s11, [#allocation8], %s333_s17, %s333_s17, %s334_s18  }
  0x53   :  { %325 = dma.done.wait [#allocation3], 128  }
  0x54   :  { %326 = vsyncadd [#allocation3], 4294967168 }
  0x55   :  { %327 = dma.done.wait [#allocation5], 256  }
  0x56   :  { %328 = vsyncadd [#allocation5], 4294967040 }
  0x57   :  { %329 = dma.done.wait [#allocation8], 256  }
  0x58   :  { %330 = vsyncadd [#allocation8], 4294967040  ;;  %v177_v0 = vld [vmem:[#allocation6] sm:$0xff]   ;;  %v181_v1 = vld [vmem:[%s490_s3] sm:$0xff]   ;;  %vm159_vm0 = vcmask 261120   ;;  %vm166_vm1 = vcmask 7168  }
  0x59   :  { %v185_v2 = vld [vmem:[#allocation9] sm:$0xff]   ;;  %v178_v3 = vunpack.c.l.bf16 %v177_v0  ;;  %v182_v4 = vunpack.c.l.bf16 %v181_v1  ;;  %v197_v8 = vld [vmem:[#allocation4] sm:$0xff]   ;;  %v179_v9 = vunpack.c.h.bf16 %v177_v0  ;;  %v201_v13 = vld [vmem:[#allocation7] sm:$0xff]   ;;  %v183_v15 = vunpack.c.h.bf16 %v181_v1 }
  0x5a   :  { %v186_v5 = vunpack.c.l.bf16 %v185_v2  ;;  %v189_v6 = vld [vmem:[%s494_s7] sm:$0xff]   ;;  %v198_v12 = vunpack.c.l.bf16 %v197_v8  ;;  %v202_v18 = vunpack.c.l.bf16 %v201_v13  ;;  %v187_v22 = vunpack.c.h.bf16 %v185_v2 }
  0x5b   :  { %v193_v7 = vld [vmem:[#allocation2] sm:$0xff]   ;;  %v190_v10 = vunpack.c.l.bf16 %v189_v6  ;;  %v191_v23 = vunpack.c.h.bf16 %v189_v6  ;;  %v199_v37 = vunpack.c.h.bf16 %v197_v8  ;;  %v203_v38 = vunpack.c.h.bf16 %v201_v13 }
  0x5c   :  { %v194_v11 = vunpack.c.l.bf16 %v193_v7  ;;  %v205_v14 = vld [vmem:[%s492_s5] sm:$0xff]   ;;  %v113_v16 = vmul.f32 %v186_v5, %v178_v3  ;;  %v121_v17 = vmul.f32 %v186_v5, %v182_v4  ;;  %v151_v27 = vmul.f32 %v202_v18, %v198_v12 }
  0x5d   :  { %v206_v19 = vunpack.c.l.bf16 %v205_v14  ;;  %v115_v20 = vmul.f32 %v190_v10, %v182_v4  ;;  %v119_v21 = vmul.f32 %v190_v10, %v178_v3  ;;  %v114_v30 = vmul.f32 %v187_v22, %v179_v9 }
  0x5e   :  { %v141_v24 = vmul.f32 %v202_v18, %v194_v11  ;;  %v116_v31 = vmul.f32 %v191_v23, %v183_v15  ;;  %v120_v34 = vmul.f32 %v191_v23, %v179_v9  ;;  %v122_v35 = vmul.f32 %v187_v22, %v183_v15 }
  0x5f   :  { %v143_v25 = vmul.f32 %v206_v19, %v198_v12  ;;  %v149_v26 = vmul.f32 %v206_v19, %v194_v11  ;;  %v117_v28 = vsub.f32 %v113_v16, %v115_v20  ;;  %v123_v29 = vadd.f32 %v121_v17, %v119_v21 }
  0x60   :  { %v195_v36 = vunpack.c.h.bf16 %v193_v7  ;;  %v207_v41 = vunpack.c.h.bf16 %v205_v14  ;;  %v118_v42 = vsub.f32 %v114_v30, %v116_v31  ;;  %v152_v44 = vmul.f32 %v203_v38, %v199_v37 }
  0x61   :  { %v145_v32 = vadd.f32 %v143_v25, %v141_v24  ;;  %v153_v33 = vsub.f32 %v149_v26, %v151_v27  ;;  %v124_v46 = vadd.f32 %v122_v35, %v120_v34 }
  0x62   :  { %v142_v43 = vmul.f32 %v203_v38, %v195_v36  ;;  %v144_v47 = vmul.f32 %v207_v41, %v199_v37  ;;  %v150_v48 = vmul.f32 %v207_v41, %v195_v36 }
  0x63   :  { %v147_v39 = vmul.f32 %v145_v32, %v117_v28  ;;  %v155_v40 = vmul.f32 %v153_v33, %v123_v29 }
  0x64   :  { %v146_v50 = vadd.f32 %v144_v47, %v142_v43  ;;  %v154_v51 = vsub.f32 %v150_v48, %v152_v44 }
  0x65   :  { %v157_v45 = vadd.f32 %v155_v40, %v147_v39 }
  0x66   :  { %v148_v52 = vmul.f32 %v146_v50, %v118_v42  ;;  %v156_v53 = vmul.f32 %v154_v51, %v124_v46 }
  0x67   :  { %v160_v49 = vsel %vm159_vm0, %v157_v45, 0.0 }
  0x68   :  { %161 = vadd.xlane.f32.xlu0 %v160_v49  ;;  %v158_v54 = vadd.f32 %v156_v53, %v148_v52 }
  0x6a   :  { %v163_v55 = vsel %vm159_vm0, %v158_v54, 0.0 }
  0x6c   :  { %164 = vadd.xlane.f32.xlu0 %v163_v55 }
  0xf5   :  { %v162_v56 = vpop.xlane.xlu0 %161 }
  0xf6   :  { %167 = vst.msk [vmem:[%s495_s8] sm:$0xff] %vm166_vm1, %v162_v56 }
  0xf9   :  { %v165_v57 = vpop.xlane.xlu0 %164 }
  0xfa   :  { %168 = vst.msk [vmem:[%s495_s8 + $0x8] sm:$0xff] %vm166_vm1, %v165_v57 }
  0xfb   :  { %173 = vsyncpa [#allocation3], 1 }
  0xfc   :  { %174 = vsyncpa [#allocation5], 1 }
  0xfd   :  { %175 = vsyncpa [#allocation8], 1 }

</bundles_post_ra>
